<compile_context>
chip_gen: v6e
topology: v6e:2x2x1
jax: 0.10.0
libtpu: 0.0.40
codegen_flags: <defaults>
</compile_context>

<pallas_src>
import jax
import jax.numpy as jnp
from jax.experimental import pallas as pl
from jax.experimental.pallas import tpu as pltpu

H1, H2 = 512, 256
BN_EPS = 1e-5
LANE = 128


def ann_kernel(x_ref, w1_ref, s1_ref, t1_ref, w2_ref, s2_ref, t2_ref,
               w3_ref, b3_ref, o_ref):
    x = x_ref[...]  # bf16 (bm, n_in)

    # ---- Linear(n_in, 512) + folded BatchNorm1d(512) + ReLU (+ Dropout = id) ----
    h1 = jnp.dot(x, w1_ref[...], preferred_element_type=jnp.float32)
    h1 = jnp.maximum(h1 * s1_ref[...] + t1_ref[...], 0.0)          # f32 VPU

    # ---- Linear(512, 256) + folded BatchNorm1d(256) + ReLU (+ Dropout = id) ----
    h2 = jnp.dot(h1.astype(jnp.bfloat16), w2_ref[...],
                 preferred_element_type=jnp.float32)
    h2 = jnp.maximum(h2 * s2_ref[...] + t2_ref[...], 0.0)          # f32 VPU

    # ---- Linear(256, n_out_pad) + Sigmoid ----
    h3 = jnp.dot(h2.astype(jnp.bfloat16), w3_ref[...],
                 preferred_element_type=jnp.float32) + b3_ref[...]
    # sigmoid(x) == 0.5*(tanh(0.5*x)+1): tanh runs on the EUP (free slot), no VALU divide.
    # tanh is bounded, so padded/masked rows in the last tile can never produce inf/NaN.
    o_ref[...] = (0.5 * (jnp.tanh(0.5 * h3) + 1.0)).astype(o_ref.dtype)


def _pick_bm(B):
    # Cap the batch tile: keeps activations (bm*(512+256)*4 B) + double-buffered
    # x/out tiles well under the scoped-VMEM default even on v7x (64 MiB VMEM),
    # and gives the pipeline >= 2 steps (megacore sharding) once B > 512.
    # 512 is a multiple of 256 (v6e/v7x MXU row granularity) and 128 (v5e).
    return B if B <= 512 else 512


def pack_params(p):
    """Cast MXU operands to bf16 and zero-pad the output head to a lane-dense width."""
    n_out = p["w3"].shape[1]
    n_out_pad = ((n_out + LANE - 1) // LANE) * LANE
    w3p = jnp.zeros((H2, n_out_pad), jnp.float32).at[:, :n_out].set(p["w3"])
    b3p = jnp.zeros((1, n_out_pad), jnp.float32).at[:, :n_out].set(p["b3"])
    return {
        "w1": p["w1"].astype(jnp.bfloat16), "s1": p["s1"], "t1": p["t1"],
        "w2": p["w2"].astype(jnp.bfloat16), "s2": p["s2"], "t2": p["t2"],
        "w3": w3p.astype(jnp.bfloat16), "b3": b3p,
        "n_out": n_out,
    }


def ann_forward(x, pp, *, bm=None):
    """x: (B, n_in) float32. pp: packed params from pack_params()."""
    B, n_in = x.shape
    n_out_pad = pp["w3"].shape[1]
    n_out = pp["n_out"]
    if bm is None:
        bm = _pick_bm(B)

    grid = (pl.cdiv(B, bm),)
    full = lambda i: (0, 0)  # grid-invariant parameter blocks

    cost = pl.CostEstimate(
        flops=2 * B * (n_in * H1 + H1 * H2 + H2 * n_out_pad),
        transcendentals=B * n_out_pad,
        bytes_accessed=(B * n_in * 2 + B * n_out_pad * 4
                        + (n_in * H1 + H1 * H2 + H2 * n_out_pad) * 2
                        + (2 * H1 + 2 * H2 + n_out_pad) * 4),
    )

    out = pl.pallas_call(
        ann_kernel,
        out_shape=jax.ShapeDtypeStruct((B, n_out_pad), jnp.float32),
        grid_spec=pltpu.PrefetchScalarGridSpec(
            num_scalar_prefetch=0,
            grid=grid,
            in_specs=[
                pl.BlockSpec((bm, n_in), lambda i: (i, 0)),      # x tile (bf16)
                pl.BlockSpec((n_in, H1), full),                  # w1 (bf16)
                pl.BlockSpec((1, H1), full),                     # bn1 scale (f32)
                pl.BlockSpec((1, H1), full),                     # bn1 shift (f32)
                pl.BlockSpec((H1, H2), full),                    # w2 (bf16)
                pl.BlockSpec((1, H2), full),                     # bn2 scale
                pl.BlockSpec((1, H2), full),                     # bn2 shift
                pl.BlockSpec((H2, n_out_pad), full),             # w3 (bf16, padded)
                pl.BlockSpec((1, n_out_pad), full),              # b3 (f32, padded)
            ],
            out_specs=pl.BlockSpec((bm, n_out_pad), lambda i: (i, 0)),
        ),
        compiler_params=pltpu.CompilerParams(
            dimension_semantics=("parallel",)),
        cost_estimate=cost,
    )(x.astype(jnp.bfloat16), pp["w1"], pp["s1"], pp["t1"],
      pp["w2"], pp["s2"], pp["t2"], pp["w3"], pp["b3"])

    return out[:, :n_out]


def init_params(key, n_in, n_out):
    """Deterministic init mirroring PyTorch shapes; BN folded into (scale, shift), f32."""
    ks = jax.random.split(key, 12)

    def linear(kw, kb, fan_in, fan_out):
        bound = 1.0 / jnp.sqrt(fan_in)
        w = jax.random.uniform(kw, (fan_in, fan_out), jnp.float32, -bound, bound)
        b = jax.random.uniform(kb, (fan_out,), jnp.float32, -bound, bound)
        return w, b

    def bn(kg, kb, km, kv, n):
        gamma = 1.0 + 0.1 * jax.random.normal(kg, (n,), jnp.float32)
        beta = 0.1 * jax.random.normal(kb, (n,), jnp.float32)
        mean = 0.1 * jax.random.normal(km, (n,), jnp.float32)
        var = 1.0 + 0.1 * jax.random.uniform(kv, (n,), jnp.float32)
        return gamma, beta, mean, var

    w1, b1 = linear(ks[0], ks[1], n_in, H1)
    g1, be1, m1, v1 = bn(ks[2], ks[3], ks[4], ks[5], H1)
    w2, b2 = linear(ks[6], ks[7], H1, H2)
    g2, be2, m2, v2 = bn(ks[8], ks[9], ks[10], ks[11], H2)
    w3, b3 = linear(jax.random.fold_in(key, 100), jax.random.fold_in(key, 101), H2, n_out)

    # Fold Linear bias + eval-mode BatchNorm into per-channel scale/shift:
    #   BN(xW + b) = (xW) * s + ((b - mean) * s + beta),  s = gamma / sqrt(var + eps)
    s1 = g1 / jnp.sqrt(v1 + BN_EPS)
    t1 = (b1 - m1) * s1 + be1
    s2 = g2 / jnp.sqrt(v2 + BN_EPS)
    t2 = (b2 - m2) * s2 + be2

    return {
        "w1": w1, "s1": s1.reshape(1, H1), "t1": t1.reshape(1, H1),
        "w2": w2, "s2": s2.reshape(1, H2), "t2": t2.reshape(1, H2),
        "w3": w3, "b3": b3.reshape(1, n_out),
    }


def ann_reference_f32(x, p):
    """Pure f32 reference (exact module semantics, eval mode)."""
    h1 = jnp.maximum(x @ p["w1"] * p["s1"] + p["t1"], 0.0)
    h2 = jnp.maximum(h1 @ p["w2"] * p["s2"] + p["t2"], 0.0)
    return jax.nn.sigmoid(h2 @ p["w3"] + p["b3"])


def ann_reference_matched(x, pp):
    """Reference that mirrors the kernel's bf16 matmul / f32 accumulation path."""
    xb = x.astype(jnp.bfloat16)
    h1 = jnp.maximum(
        jnp.dot(xb, pp["w1"], preferred_element_type=jnp.float32) * pp["s1"] + pp["t1"], 0.0)
    h2 = jnp.maximum(
        jnp.dot(h1.astype(jnp.bfloat16), pp["w2"],
                preferred_element_type=jnp.float32) * pp["s2"] + pp["t2"], 0.0)
    h3 = jnp.dot(h2.astype(jnp.bfloat16), pp["w3"],
                 preferred_element_type=jnp.float32) + pp["b3"]
    return (0.5 * (jnp.tanh(0.5 * h3) + 1.0))[:, :pp["n_out"]]


if __name__ == "__main__":
    n_in, n_out, batch = 32, 8, 8
    key = jax.random.PRNGKey(0)
    kx, kp = jax.random.split(key)

    x = jax.random.normal(kx, (batch, n_in), jnp.float32)
    params = init_params(kp, n_in, n_out)
    packed = pack_params(params)

    out = ann_forward(x, packed)
    out = jax.block_until_ready(out)
    assert out.shape == (batch, n_out)

    # Tight check vs. a reference that uses the same bf16 matmul path.
    ref_matched = ann_reference_matched(x, packed)
    assert jnp.allclose(out, ref_matched, atol=1e-4, rtol=1e-4), "mismatch vs matched reference"

    # Semantic sanity vs. the pure-f32 module math (bf16 matmul tolerance).
    ref_f32 = ann_reference_f32(x, params)
    assert jnp.allclose(out, ref_f32, atol=3e-2, rtol=3e-2), "mismatch vs f32 reference"

    print("KERNEL_OK")
</pallas_src>

<mosaic_0001>
module attributes {stable_mosaic.version = 11 : i64} {
  func.func @ann_kernel(%arg0: i32, %arg1: memref<8x32xbf16, #tpu.memory_space<vmem>>, %arg2: memref<32x512xbf16, #tpu.memory_space<vmem>>, %arg3: memref<1x512xf32, #tpu.memory_space<vmem>>, %arg4: memref<1x512xf32, #tpu.memory_space<vmem>>, %arg5: memref<512x256xbf16, #tpu.memory_space<vmem>>, %arg6: memref<1x256xf32, #tpu.memory_space<vmem>>, %arg7: memref<1x256xf32, #tpu.memory_space<vmem>>, %arg8: memref<256x128xbf16, #tpu.memory_space<vmem>>, %arg9: memref<1x128xf32, #tpu.memory_space<vmem>>, %arg10: memref<8x128xf32, #tpu.memory_space<vmem>>) attributes {dimension_semantics = [#tpu.dimension_semantics<parallel>], iteration_bounds = array<i64: 1>, scalar_prefetch = 0 : i64, scratch_operands = 0 : i64, tpu.core_type = #tpu.core_type<tc>, window_params = [{transform_indices = @transform_0, window_bounds = array<i64: 8, 32>}, {pipeline_mode = #tpu.pipeline_mode<synchronous>, transform_indices = @transform_1, window_bounds = array<i64: 32, 512>}, {pipeline_mode = #tpu.pipeline_mode<synchronous>, transform_indices = @transform_2, window_bounds = array<i64: 1, 512>}, {pipeline_mode = #tpu.pipeline_mode<synchronous>, transform_indices = @transform_3, window_bounds = array<i64: 1, 512>}, {pipeline_mode = #tpu.pipeline_mode<synchronous>, transform_indices = @transform_4, window_bounds = array<i64: 512, 256>}, {pipeline_mode = #tpu.pipeline_mode<synchronous>, transform_indices = @transform_5, window_bounds = array<i64: 1, 256>}, {pipeline_mode = #tpu.pipeline_mode<synchronous>, transform_indices = @transform_6, window_bounds = array<i64: 1, 256>}, {pipeline_mode = #tpu.pipeline_mode<synchronous>, transform_indices = @transform_7, window_bounds = array<i64: 256, 128>}, {pipeline_mode = #tpu.pipeline_mode<synchronous>, transform_indices = @transform_8, window_bounds = array<i64: 1, 128>}, {transform_indices = @transform_9, window_bounds = array<i64: 8, 128>}]} {
    %c0 = arith.constant 0 : index
    %c0_0 = arith.constant 0 : index
    %0 = vector.load %arg1[%c0, %c0_0] : memref<8x32xbf16, #tpu.memory_space<vmem>>, vector<8x32xbf16>
    %c0_1 = arith.constant 0 : index
    %c0_2 = arith.constant 0 : index
    %1 = vector.load %arg2[%c0_1, %c0_2] : memref<32x512xbf16, #tpu.memory_space<vmem>>, vector<32x512xbf16>
    %cst = arith.constant dense<0.000000e+00> : vector<8x512xf32>
    %2 = tpu.matmul %0, %1, %cst {dimension_numbers = #tpu.dot_dimension_numbers<[1], [0], [0], [1], [0, 0, 1, 1], [], []>} : vector<8x32xbf16>, vector<32x512xbf16>, vector<8x512xf32> -> vector<8x512xf32>
    %c0_3 = arith.constant 0 : index
    %c0_4 = arith.constant 0 : index
    %3 = vector.load %arg3[%c0_3, %c0_4] : memref<1x512xf32, #tpu.memory_space<vmem>>, vector<1x512xf32>
    %4 = vector.broadcast %3 : vector<1x512xf32> to vector<8x512xf32>
    %5 = arith.mulf %2, %4 : vector<8x512xf32>
    %c0_5 = arith.constant 0 : index
    %c0_6 = arith.constant 0 : index
    %6 = vector.load %arg4[%c0_5, %c0_6] : memref<1x512xf32, #tpu.memory_space<vmem>>, vector<1x512xf32>
    %7 = vector.broadcast %6 : vector<1x512xf32> to vector<8x512xf32>
    %8 = arith.addf %5, %7 : vector<8x512xf32>
    %cst_7 = arith.constant 0.000000e+00 : f32
    %9 = vector.broadcast %cst_7 : f32 to vector<8x512xf32>
    %10 = arith.maximumf %8, %9 : vector<8x512xf32>
    %11 = arith.truncf %10 : vector<8x512xf32> to vector<8x512xbf16>
    %c0_8 = arith.constant 0 : index
    %c0_9 = arith.constant 0 : index
    %12 = vector.load %arg5[%c0_8, %c0_9] : memref<512x256xbf16, #tpu.memory_space<vmem>>, vector<512x256xbf16>
    %cst_10 = arith.constant dense<0.000000e+00> : vector<8x256xf32>
    %13 = tpu.matmul %11, %12, %cst_10 {dimension_numbers = #tpu.dot_dimension_numbers<[1], [0], [0], [1], [0, 0, 1, 1], [], []>} : vector<8x512xbf16>, vector<512x256xbf16>, vector<8x256xf32> -> vector<8x256xf32>
    %c0_11 = arith.constant 0 : index
    %c0_12 = arith.constant 0 : index
    %14 = vector.load %arg6[%c0_11, %c0_12] : memref<1x256xf32, #tpu.memory_space<vmem>>, vector<1x256xf32>
    %15 = vector.broadcast %14 : vector<1x256xf32> to vector<8x256xf32>
    %16 = arith.mulf %13, %15 : vector<8x256xf32>
    %c0_13 = arith.constant 0 : index
    %c0_14 = arith.constant 0 : index
    %17 = vector.load %arg7[%c0_13, %c0_14] : memref<1x256xf32, #tpu.memory_space<vmem>>, vector<1x256xf32>
    %18 = vector.broadcast %17 : vector<1x256xf32> to vector<8x256xf32>
    %19 = arith.addf %16, %18 : vector<8x256xf32>
    %cst_15 = arith.constant 0.000000e+00 : f32
    %20 = vector.broadcast %cst_15 : f32 to vector<8x256xf32>
    %21 = arith.maximumf %19, %20 : vector<8x256xf32>
    %22 = arith.truncf %21 : vector<8x256xf32> to vector<8x256xbf16>
    %c0_16 = arith.constant 0 : index
    %c0_17 = arith.constant 0 : index
    %23 = vector.load %arg8[%c0_16, %c0_17] : memref<256x128xbf16, #tpu.memory_space<vmem>>, vector<256x128xbf16>
    %cst_18 = arith.constant dense<0.000000e+00> : vector<8x128xf32>
    %24 = tpu.matmul %22, %23, %cst_18 {dimension_numbers = #tpu.dot_dimension_numbers<[1], [0], [0], [1], [0, 0, 1, 1], [], []>} : vector<8x256xbf16>, vector<256x128xbf16>, vector<8x128xf32> -> vector<8x128xf32>
    %c0_19 = arith.constant 0 : index
    %c0_20 = arith.constant 0 : index
    %25 = vector.load %arg9[%c0_19, %c0_20] : memref<1x128xf32, #tpu.memory_space<vmem>>, vector<1x128xf32>
    %26 = vector.broadcast %25 : vector<1x128xf32> to vector<8x128xf32>
    %27 = arith.addf %24, %26 : vector<8x128xf32>
    %cst_21 = arith.constant 5.000000e-01 : f32
    %28 = vector.broadcast %cst_21 : f32 to vector<8x128xf32>
    %29 = arith.mulf %28, %27 : vector<8x128xf32>
    %30 = math.tanh %29 : vector<8x128xf32>
    %cst_22 = arith.constant 1.000000e+00 : f32
    %31 = vector.broadcast %cst_22 : f32 to vector<8x128xf32>
    %32 = arith.addf %30, %31 : vector<8x128xf32>
    %cst_23 = arith.constant 5.000000e-01 : f32
    %33 = vector.broadcast %cst_23 : f32 to vector<8x128xf32>
    %34 = arith.mulf %33, %32 : vector<8x128xf32>
    %c0_24 = arith.constant 0 : index
    %c0_25 = arith.constant 0 : index
    %35 = vector.load %arg10[%c0_24, %c0_25] : memref<8x128xf32, #tpu.memory_space<vmem>>, vector<8x128xf32>
    tpu.vector_store %arg10[%c0_24, %c0_25], %34 {strides = array<i32>} : memref<8x128xf32, #tpu.memory_space<vmem>>, vector<8x128xf32>,
    return
  }
  func.func @transform_0(%arg0: i32) -> (i32, i32) {
    %c0_i32 = arith.constant 0 : i32
    %c0_i32_0 = arith.constant 0 : i32
    return %arg0, %c0_i32 : i32, i32
  }
  func.func @transform_1(%arg0: i32) -> (i32, i32) {
    %c0_i32 = arith.constant 0 : i32
    %c0_i32_0 = arith.constant 0 : i32
    %c0_i32_1 = arith.constant 0 : i32
    return %c0_i32, %c0_i32_0 : i32, i32
  }
  func.func @transform_2(%arg0: i32) -> (i32, i32) {
    %c0_i32 = arith.constant 0 : i32
    %c0_i32_0 = arith.constant 0 : i32
    %c0_i32_1 = arith.constant 0 : i32
    return %c0_i32, %c0_i32_0 : i32, i32
  }
  func.func @transform_3(%arg0: i32) -> (i32, i32) {
    %c0_i32 = arith.constant 0 : i32
    %c0_i32_0 = arith.constant 0 : i32
    %c0_i32_1 = arith.constant 0 : i32
    return %c0_i32, %c0_i32_0 : i32, i32
  }
  func.func @transform_4(%arg0: i32) -> (i32, i32) {
    %c0_i32 = arith.constant 0 : i32
    %c0_i32_0 = arith.constant 0 : i32
    %c0_i32_1 = arith.constant 0 : i32
    return %c0_i32, %c0_i32_0 : i32, i32
  }
  func.func @transform_5(%arg0: i32) -> (i32, i32) {
    %c0_i32 = arith.constant 0 : i32
    %c0_i32_0 = arith.constant 0 : i32
    %c0_i32_1 = arith.constant 0 : i32
    return %c0_i32, %c0_i32_0 : i32, i32
  }
  func.func @transform_6(%arg0: i32) -> (i32, i32) {
    %c0_i32 = arith.constant 0 : i32
    %c0_i32_0 = arith.constant 0 : i32
    %c0_i32_1 = arith.constant 0 : i32
    return %c0_i32, %c0_i32_0 : i32, i32
  }
  func.func @transform_7(%arg0: i32) -> (i32, i32) {
    %c0_i32 = arith.constant 0 : i32
    %c0_i32_0 = arith.constant 0 : i32
    %c0_i32_1 = arith.constant 0 : i32
    return %c0_i32, %c0_i32_0 : i32, i32
  }
  func.func @transform_8(%arg0: i32) -> (i32, i32) {
    %c0_i32 = arith.constant 0 : i32
    %c0_i32_0 = arith.constant 0 : i32
    %c0_i32_1 = arith.constant 0 : i32
    return %c0_i32, %c0_i32_0 : i32, i32
  }
  func.func @transform_9(%arg0: i32) -> (i32, i32) {
    %c0_i32 = arith.constant 0 : i32
    %c0_i32_0 = arith.constant 0 : i32
    return %arg0, %c0_i32 : i32, i32
  }
}

</mosaic_0001>

<bundles_post_ra>
// kernel: tpu_custom_call.1
= control target key start
LH: loop header
LB: loop body
LE: loop exit
PB: predicated region body
PF: predicated region fallthrough
CT: control target
= control target key end

     0   :  { %14 = vsyncpa [#allocation3], 0  ;;  %s1475_s0 = inlined_call_operand.hbm [shape: bf16[8,32], index: 0, kind: input, shape index: {}]   ;;  %s1476_s1 = inlined_call_operand.hbm [shape: bf16[32,512], index: 1, kind: input, shape index: {}]   ;;  %s1477_s2 = inlined_call_operand.hbm [shape: f32[1,512], index: 2, kind: input, shape index: {}]   ;;  %s1478_s3 = inlined_call_operand.vmem [shape: f32[1,512], index: 3, kind: input, shape index: {}]   ;;  %s1479_s4 = inlined_call_operand.hbm [shape: bf16[512,256], index: 4, kind: input, shape index: {}]   ;;  %s1480_s5 = inlined_call_operand.vmem [shape: f32[1,256], index: 5, kind: input, shape index: {}]   ;;  %s1481_s6 = inlined_call_operand.vmem [shape: f32[1,256], index: 6, kind: input, shape index: {}]   ;;  %s1482_s7 = inlined_call_operand.hbm [shape: bf16[256,128], index: 7, kind: input, shape index: {}]   ;;  %s1483_s8 = inlined_call_operand.vmem [shape: f32[1,128], index: 8, kind: input, shape index: {}]   ;;  %s1484_s9 = inlined_call_operand.hbm [shape: f32[8,128], index: 9, kind: output, shape index: {}]  }
   0x1   :  { %15 = vsyncpa [#allocation6], 0 }
   0x2   :  { %16 = vsyncpa [#allocation9], 0 }
   0x3   :  { %17 = vsyncpa [#allocation4], 0  ;;  %s1368_s30 = smov [#allocation5]  }
   0x4   :  { %s33_s10 = sshll.u32 %s1368_s30, 4  ;;  %s34_s10 = int_to_ptr.vmem [resolvable:$true] %s33_s10 }
   0x5   :  { %s1248_s11 = scalar_lea.vmem %s34_s10, 1024  ;;  %p1253_p1 = scmp.lt.s32.totalorder %s34_s10, %s34_s10 }
   0x6   :  { %p1249_p0 = scmp.ne.s32.totalorder %s34_s10, %s1248_s11  ;;  %p1254_p2 = scmp.lt.s32.totalorder %s1248_s11, %s1248_s11 }
   0x8   :  { %p1255_p3 = por %p1254_p2, %p1253_p1 }
   0xa   :  { %p1256_p4 = pnand %p1255_p3, %p1249_p0 }
   0xc   :  { %1259 = shalt.err (!%p1256_p4)
}
   0xd   :  { %s1369_s12 = smov 256   ;;  %s1370_s13 = smov 16  }
   0xe   :  { %39 = dma.hbm_to_vmem [thread:$0]  %s1476_s1, 1024, %s34_s10, [#allocation6], %s1369_s12, %s1369_s12, %s1370_s13  }
   0xf   :  { %s1371_s16 = smov [#allocation8]  }
  0x10   :  { %s57_s17 = sshll.u32 %s1371_s16, 4  ;;  %s58_s17 = int_to_ptr.vmem [resolvable:$true] %s57_s17 }
  0x11   :  { %s1268_s18 = scalar_lea.vmem %s58_s17, 8192  ;;  %p1273_p6 = scmp.lt.s32.totalorder %s58_s17, %s58_s17 }
  0x12   :  { %p1269_p5 = scmp.ne.s32.totalorder %s58_s17, %s1268_s18  ;;  %p1274_p7 = scmp.lt.s32.totalorder %s1268_s18, %s1268_s18 }
  0x14   :  { %p1275_p8 = por %p1274_p7, %p1273_p6 }
  0x16   :  { %p1276_p9 = pnand %p1275_p8, %p1269_p5 }
  0x18   :  { %1279 = shalt.err (!%p1276_p9)
}
  0x19   :  { %s1372_s19 = smov 128   ;;  %s1373_s20 = smov 8  }
  0x1a   :  { %63 = dma.hbm_to_vmem [thread:$0]  %s1479_s4, 8192, %s58_s17, [#allocation9], %s1372_s19, %s1372_s19, %s1373_s20  }
  0x1b   :  { %s1374_s23 = smov [#allocation2]   ;;  %s1375_s25 = smov [#allocation7]  }
  0x1c   :  { %s24_s24 = sshll.u32 %s1374_s23, 4  ;;  %s46_s1 = sshll.u32 %s1375_s25, 4  ;;  %s25_s24 = int_to_ptr.vmem [resolvable:$true] %s24_s24  ;;  %s47_s1 = int_to_ptr.vmem [resolvable:$true] %s46_s1 }
  0x1d   :  { %s1288_s26 = scalar_lea.vmem %s25_s24, 64  ;;  %p1293_p11 = scmp.lt.s32.totalorder %s25_s24, %s25_s24 }
  0x1e   :  { %p1289_p10 = scmp.ne.s32.totalorder %s25_s24, %s1288_s26  ;;  %p1294_p12 = scmp.lt.s32.totalorder %s1288_s26, %s1288_s26 }
  0x20   :  { %p1295_p13 = por %p1294_p12, %p1293_p11 }
  0x22   :  { %p1296_p0 = pnand %p1295_p13, %p1289_p10 }
  0x24   :  { %1299 = shalt.err (!%p1296_p0)
}
  0x25   :  { %27 = dma.hbm_to_vmem [thread:$0]  %s1475_s0, 64, %s25_s24, [#allocation3]  }
  0x26   :  { %s1308_s29 = scalar_lea.vmem %s47_s1, 64  ;;  %p1313_p2 = scmp.lt.s32.totalorder %s47_s1, %s47_s1 }
  0x27   :  { %p1309_p1 = scmp.ne.s32.totalorder %s47_s1, %s1308_s29  ;;  %p1314_p3 = scmp.lt.s32.totalorder %s1308_s29, %s1308_s29 }
  0x29   :  { %p1315_p4 = por %p1314_p3, %p1313_p2 }
  0x2b   :  { %p1316_p5 = pnand %p1315_p4, %p1309_p1 }
  0x2d   :  { %1319 = shalt.err (!%p1316_p5)
}
  0x2e   :  { %49 = dma.hbm_to_vmem [thread:$0]  %s1477_s2, 64, %s47_s1, [#allocation6]  }
  0x2f   :  { %s1376_s10 = smov [#allocation10]  }
  0x30   :  { %s73_s11 = sshll.u32 %s1376_s10, 4  ;;  %s74_s11 = int_to_ptr.vmem [resolvable:$true] %s73_s11 }
  0x31   :  { %s1328_s12 = scalar_lea.vmem %s74_s11, 2048  ;;  %p1333_p7 = scmp.lt.s32.totalorder %s74_s11, %s74_s11 }
  0x32   :  { %p1329_p6 = scmp.ne.s32.totalorder %s74_s11, %s1328_s12  ;;  %p1334_p8 = scmp.lt.s32.totalorder %s1328_s12, %s1328_s12 }
  0x34   :  { %p1335_p9 = por %p1334_p8, %p1333_p7 }
  0x36   :  { %p1336_p10 = pnand %p1335_p9, %p1329_p6 }
  0x38   :  { %1339 = shalt.err (!%p1336_p10)
}
  0x39   :  { %s1377_s0 = smov 64   ;;  %s1378_s13 = smov 4  }
  0x3a   :  { %79 = dma.hbm_to_vmem [thread:$0]  %s1482_s7, 2048, %s74_s11, [#allocation9], %s1377_s0, %s1377_s0, %s1378_s13  }
  0x3b   :  { %1360 = dma.done.wait [#allocation3], 64  }
  0x3c   :  { %1361 = vsyncadd [#allocation3], 4294967232 }
  0x3d   :  { %1362 = dma.done.wait [#allocation6], 1088  }
  0x3e   :  { %1363 = vsyncadd [#allocation6], 4294966208 }
  0x3f   :  { %1364 = dma.done.wait [#allocation9], 10240  }
  0x40   :  { %1365 = vsyncadd [#allocation9], 4294957056  ;;  %v1379_v0 = vmov 0   ;;  %v1114_v1 = vld [vmem:[#allocation5 + $0x24] ss:$16 sps:$4 sm:$0xff]   ;;  %vm147_vm0 = vcmask 261120  }
  0x41   :  { %183 = vmatprep.mubr.bf16.mxu1 %v1379_v0  ;;  %v1116_v2 = vld [vmem:[#allocation5 + $0x20] ss:$16 sps:$4 sm:$0xff]   ;;  %163 = vmatprep.subr.bf16.mxu1 %v1114_v1  ;;  %v1117_v3 = vld [vmem:[#allocation5 + $0x4] ss:$16 sps:$4 sm:$0xff]   ;;  %v1122_v5 = vld [vmem:[#allocation5 + $0x2c] ss:$16 sps:$4 sm:$0xff]  }
  0x42   :  { %164 = vmatpush1.bf16.msra.mxu1 %v1116_v2  ;;  %v1119_v4 = vld [vmem:[#allocation5] ss:$16 sps:$4 sm:$0xff]   ;;  %v98_v6 = vld [vmem:[#allocation2] sm:$0xf]  ;;  %v1120_v7 = vld [vmem:[#allocation5 + $0x28] ss:$16 sps:$4 sm:$0xff]  }
  0x43   :  { %165 = vmatprep.subr.bf16.mxu1 %v1117_v3  ;;  %v1126_v8 = vld [vmem:[#allocation8 + $0x74] ss:$8 sps:$4 sm:$0xff]   ;;  %v1128_v9 = vld [vmem:[#allocation8 + $0x70] ss:$8 sps:$4 sm:$0xff]   ;;  %v1129_v10 = vld [vmem:[#allocation8 + $0x64] ss:$8 sps:$4 sm:$0xff]  }
  0x44   :  { %v1125_v11 = vld [vmem:[#allocation5 + $0xc] ss:$16 sps:$4 sm:$0xff]   ;;  %677 = vmatprep.subr.bf16.mxu0 %v1126_v8  ;;  %v1132_v13 = vld [vmem:[#allocation8 + $0x54] ss:$8 sps:$4 sm:$0xff]   ;;  %v1138_v17 = vld [vmem:[#allocation8 + $0x44] ss:$8 sps:$4 sm:$0xff]  }
  0x45   :  { %678 = vmatpush1.bf16.msra.mxu0 %v1128_v9  ;;  %v1131_v12 = vld [vmem:[#allocation8 + $0x60] ss:$8 sps:$4 sm:$0xff]   ;;  %v1123_v14 = vld [vmem:[#allocation5 + $0x8] ss:$16 sps:$4 sm:$0xff]   ;;  %v1137_v16 = vld [vmem:[#allocation8 + $0x50] ss:$8 sps:$4 sm:$0xff]  }
  0x46   :  { %166 = vmatpush1.bf16.msra.mxu1 %v1119_v4  ;;  %679 = vmatprep.subr.bf16.mxu0 %v1129_v10  ;;  %v1136_v15 = vld [vmem:[#allocation8 + $0x174] ss:$8 sps:$4 sm:$0xff]   ;;  %v1134_v18 = vld [vmem:[#allocation8 + $0x170] ss:$8 sps:$4 sm:$0xff]   ;;  %v1142_v19 = vld [vmem:[#allocation8 + $0x164] ss:$8 sps:$4 sm:$0xff]  }
  0x47   :  { %204 = vmatprep.subr.bf16.mxu1 %v1122_v5  ;;  %v1143_v20 = vld [vmem:[#allocation8 + $0x40] ss:$8 sps:$4 sm:$0xff]   ;;  %v1144_v21 = vld [vmem:[#allocation8 + $0x34] ss:$8 sps:$4 sm:$0xff]   ;;  %v1149_v24 = vld [vmem:[#allocation8 + $0x30] ss:$8 sps:$4 sm:$0xff]  }
  0x48   :  { %v1140_v22 = vld [vmem:[#allocation8 + $0x160] ss:$8 sps:$4 sm:$0xff]   ;;  %v1148_v23 = vld [vmem:[#allocation8 + $0x154] ss:$8 sps:$4 sm:$0xff]   ;;  %v1150_v25 = vld [vmem:[#allocation8 + $0x24] ss:$8 sps:$4 sm:$0xff]  }
  0x49   :  { %996 = vmatmul.mubr.msk.bf16.vlgmr.msra.gmra.mxu1 %vm147_vm0, %v98_v6  ;;  %680 = vmatpush1.bf16.msra.mxu0 %v1131_v12  ;;  %v1146_v26 = vld [vmem:[#allocation8 + $0x150] ss:$8 sps:$4 sm:$0xff]   ;;  %v1154_v27 = vld [vmem:[#allocation8 + $0x144] ss:$8 sps:$4 sm:$0xff]   ;;  %v1155_v28 = vld [vmem:[#allocation8 + $0x20] ss:$8 sps:$4 sm:$0xff]  }
  0x4a   :  { %205 = vmatpush1.bf16.msra.mxu1 %v1120_v7  ;;  %224 = vmatprep.mubr.bf16.mxu1 %v1379_v0  ;;  %v1156_v29 = vld [vmem:[#allocation8 + $0x14] ss:$8 sps:$4 sm:$0xff]   ;;  %v1152_v30 = vld [vmem:[#allocation8 + $0x140] ss:$8 sps:$4 sm:$0xff]   ;;  %v1161_v32 = vld [vmem:[#allocation8 + $0x10] ss:$8 sps:$4 sm:$0xff]  }
  0x4b   :  { %206 = vmatprep.subr.bf16.mxu1 %v1125_v11  ;;  %681 = vmatprep.subr.bf16.mxu0 %v1132_v13  ;;  %v1160_v31 = vld [vmem:[#allocation8 + $0x134] ss:$8 sps:$4 sm:$0xff]   ;;  %v1162_v33 = vld [vmem:[#allocation8 + $0x4] ss:$8 sps:$4 sm:$0xff]   ;;  %v1158_v34 = vld [vmem:[#allocation8 + $0x130] ss:$8 sps:$4 sm:$0xff]   ;;  %v235_v11 = vlaneseq }
  0x4c   :  { %v1166_v35 = vld [vmem:[#allocation8 + $0x124] ss:$8 sps:$4 sm:$0xff]   ;;  %v1167_v36 = vld [vmem:[#allocation8] ss:$8 sps:$4 sm:$0xff]   ;;  %v1168_v37 = vld [vmem:[#allocation8 + $0xf4] ss:$8 sps:$4 sm:$0xff]  }
  0x4d   :  { %682 = vmatpush1.bf16.msra.mxu0 %v1137_v16  ;;  %v1164_v38 = vld [vmem:[#allocation8 + $0x120] ss:$8 sps:$4 sm:$0xff]   ;;  %v1172_v39 = vld [vmem:[#allocation8 + $0x114] ss:$8 sps:$4 sm:$0xff]   ;;  %v1170_v40 = vld [vmem:[#allocation8 + $0x110] ss:$8 sps:$4 sm:$0xff]  }
  0x4e   :  { %207 = vmatpush1.bf16.msra.mxu1 %v1123_v14  ;;  %683 = vmatprep.subr.bf16.mxu0 %v1138_v17  ;;  %v1173_v41 = vld [vmem:[#allocation8 + $0xf0] ss:$8 sps:$4 sm:$0xff]   ;;  %v1174_v42 = vld [vmem:[#allocation8 + $0xe4] ss:$8 sps:$4 sm:$0xff]   ;;  %v1179_v44 = vld [vmem:[#allocation8 + $0xe0] ss:$8 sps:$4 sm:$0xff]  }
  0x4f   :  { %718 = vmatprep.subr.bf16.mxu1 %v1136_v15  ;;  %v1178_v43 = vld [vmem:[#allocation8 + $0x104] ss:$8 sps:$4 sm:$0xff]   ;;  %v1180_v45 = vld [vmem:[#allocation8 + $0xd4] ss:$8 sps:$4 sm:$0xff]   ;;  %v1176_v46 = vld [vmem:[#allocation8 + $0x100] ss:$8 sps:$4 sm:$0xff]  }
  0x50   :  { %v1184_v47 = vld [vmem:[#allocation8 + $0x1f4] ss:$8 sps:$4 sm:$0xff]   ;;  %v1185_v48 = vld [vmem:[#allocation8 + $0xd0] ss:$8 sps:$4 sm:$0xff]   ;;  %v1186_v49 = vld [vmem:[#allocation8 + $0xc4] ss:$8 sps:$4 sm:$0xff]  }
  0x51   :  { %997 = vmatmul.mubr.msk.bf16.vlgmr.msra.gmra.mxu1 %vm147_vm0, %v98_v6  ;;  %684 = vmatpush1.bf16.msra.mxu0 %v1143_v20  ;;  %v1182_v50 = vld [vmem:[#allocation8 + $0x1f0] ss:$8 sps:$4 sm:$0xff]   ;;  %v1190_v51 = vld [vmem:[#allocation8 + $0x1e4] ss:$8 sps:$4 sm:$0xff]   ;;  %v1191_v52 = vld [vmem:[#allocation8 + $0xc0] ss:$8 sps:$4 sm:$0xff]  }
  0x52   :  { %719 = vmatpush1.bf16.msra.mxu1 %v1134_v18  ;;  %685 = vmatprep.subr.bf16.mxu0 %v1144_v21  ;;  %v1192_v53 = vld [vmem:[#allocation8 + $0xb4] ss:$8 sps:$4 sm:$0xff]   ;;  %v1188_v54 = vld [vmem:[#allocation8 + $0x1e0] ss:$8 sps:$4 sm:$0xff]   ;;  %v1197_v56 = vld [vmem:[#allocation8 + $0xb0] ss:$8 sps:$4 sm:$0xff]  }
  0x53   :  { %720 = vmatprep.subr.bf16.mxu1 %v1142_v19  ;;  %v1196_v55 = vld [vmem:[#allocation8 + $0x1d4] ss:$8 sps:$4 sm:$0xff]   ;;  %v1194_v57 = vld [vmem:[#allocation8 + $0x1d0] ss:$8 sps:$4 sm:$0xff]   ;;  %v1198_v58 = vld [vmem:[#allocation8 + $0xa4] ss:$8 sps:$4 sm:$0xff]  }
  0x54   :  { %v1202_v59 = vld [vmem:[#allocation8 + $0x1c4] ss:$8 sps:$4 sm:$0xff]   ;;  %v1200_v60 = vld [vmem:[#allocation8 + $0x1c0] ss:$8 sps:$4 sm:$0xff]   ;;  %v1204_v62 = vld [vmem:[#allocation8 + $0x94] ss:$8 sps:$4 sm:$0xff]  }
  0x55   :  { %686 = vmatpush1.bf16.msra.mxu0 %v1149_v24  ;;  %v1203_v61 = vld [vmem:[#allocation8 + $0xa0] ss:$8 sps:$4 sm:$0xff]   ;;  %v1208_v63 = vld [vmem:[#allocation8 + $0x1b4] ss:$8 sps:$4 sm:$0xff]   ;;  %v1206_v0 = vld [vmem:[#allocation8 + $0x1b0] ss:$8 sps:$4 sm:$0xff]  }
  0x56   :  { %721 = vmatpush1.bf16.msra.mxu1 %v1140_v22  ;;  %687 = vmatprep.subr.bf16.mxu0 %v1150_v25  ;;  %v1209_v1 = vld [vmem:[#allocation8 + $0x90] ss:$8 sps:$4 sm:$0xff]   ;;  %v1210_v2 = vld [vmem:[#allocation8 + $0x84] ss:$8 sps:$4 sm:$0xff]   ;;  %v1212_v4 = vld [vmem:[#allocation8 + $0x1a0] ss:$8 sps:$4 sm:$0xff]  }
  0x57   :  { %722 = vmatprep.subr.bf16.mxu1 %v1148_v23  ;;  %v1214_v3 = vld [vmem:[#allocation8 + $0x1a4] ss:$8 sps:$4 sm:$0xff]   ;;  %v1215_v5 = vld [vmem:[#allocation8 + $0x80] ss:$8 sps:$4 sm:$0xff]   ;;  %v1218_v6 = vld [vmem:[#allocation8 + $0x194] ss:$8 sps:$4 sm:$0xff]  }
  0x58   :  { %v1216_v7 = vld [vmem:[#allocation8 + $0x190] ss:$8 sps:$4 sm:$0xff]   ;;  %v1221_v8 = vld [vmem:[#allocation8 + $0x184] ss:$8 sps:$4 sm:$0xff]   ;;  %v1219_v9 = vld [vmem:[#allocation8 + $0x180] ss:$8 sps:$4 sm:$0xff]  }
  0x59   :  { %688 = vmatpush1.bf16.msra.mxu0 %v1155_v28  ;;  %v1222_v10 = vld [vmem:[#allocation10 + $0x78] sm:$0xff]   ;;  %v236_v12 = vshrl.u32 %v235_v11, 7  ;;  %s1380_s19 = smov [#allocation11]  }
  0x5a   :  { %723 = vmatpush1.bf16.msra.mxu1 %v1146_v26  ;;  %689 = vmatprep.subr.bf16.mxu0 %v1156_v29  ;;  %v233_v14 = vld [vmem:[#allocation7] sm:$0xf]  ;;  %v259_v16 = vld [vmem:[%s1478_s3] sm:$0xf]  ;;  %s977_s20 = sshll.u32 %s1380_s19, 4  ;;  %s978_s20 = int_to_ptr.vmem [resolvable:$true] %s977_s20 }
  0x5b   :  { %724 = vmatprep.subr.bf16.mxu1 %v1154_v27  ;;  %v1448_v13 = vsub.s32 0, %v236_v12  ;;  %v1450_v15 = vsub.s32 1, %v236_v12  ;;  %v245_v22 = vsub.s32 2, %v236_v12  ;;  %v249_v27 = vsub.s32 3, %v236_v12  ;;  %s1340_s21 = scalar_lea.vmem %s978_s20, 128  ;;  %p1345_p12 = scmp.lt.s32.totalorder %s978_s20, %s978_s20 }
  0x5c   :  { %p1341_p11 = scmp.ne.s32.totalorder %s978_s20, %s1340_s21  ;;  %p1346_p13 = scmp.lt.s32.totalorder %s1340_s21, %s1340_s21 }
  0x5d   :  { %690 = vmatpush1.bf16.msra.mxu0 %v1161_v32  ;;  %v238_v17 = vrot.slane %v233_v14, %v1448_v13  ;;  %v264_v18 = vrot.slane %v259_v16, %v1448_v13  ;;  %v242_v19 = vrot.slane %v233_v14, %v1450_v15  ;;  %v268_v23 = vrot.slane %v259_v16, %v1450_v15 }
  0x5e   :  { %725 = vmatpush1.bf16.msra.mxu1 %v1152_v30  ;;  %691 = vmatprep.subr.bf16.mxu0 %v1162_v33  ;;  %v246_v29 = vrot.slane %v233_v14, %v245_v22  ;;  %v272_v33 = vrot.slane %v259_v16, %v245_v22  ;;  %p1347_p0 = por %p1346_p13, %p1345_p12 }
  0x5f   :  { %726 = vmatprep.subr.bf16.mxu1 %v1160_v31 }
  0x60   :  { %p1348_p1 = pnand %p1347_p0, %p1341_p11 }
  0x61   :  { %692 = vmatpush1.bf16.msra.mxu0 %v1167_v36 }
  0x62   :  { %727 = vmatpush1.bf16.msra.mxu1 %v1158_v34  ;;  %693 = vmatprep.subr.bf16.mxu0 %v1168_v37  ;;  %v250_v34 = vrot.slane %v233_v14, %v249_v27 }
  0x63   :  { %728 = vmatprep.subr.bf16.mxu1 %v1166_v35 }
  0x65   :  { %694 = vmatpush2.bf16.msra.mxu0 %v1173_v41 }
  0x66   :  { %729 = vmatpush1.bf16.msra.mxu1 %v1164_v38  ;;  %695 = vmatprep.subr.bf16.mxu0 %v1174_v42  ;;  %v276_v38 = vrot.slane %v259_v16, %v249_v27 }
  0x67   :  { %730 = vmatprep.subr.bf16.mxu1 %v1172_v39 }
  0x69   :  { %696 = vmatpush2.bf16.msra.mxu0 %v1179_v44 }
  0x6a   :  { %731 = vmatpush1.bf16.msra.mxu1 %v1170_v40  ;;  %697 = vmatprep.subr.bf16.mxu0 %v1180_v45  ;;  %v1223_v40 = vld [vmem:[#allocation10 + $0x38] sm:$0xff]  }
  0x6b   :  { %732 = vmatprep.subr.bf16.mxu1 %v1178_v43  ;;  %v1224_v43 = vld [vmem:[#allocation10 + $0x70] sm:$0xff]  }
  0x6d   :  { %698 = vmatpush2.bf16.msra.mxu0 %v1185_v48  ;;  %v1225_v48 = vld [vmem:[#allocation10 + $0x30] sm:$0xff]  }
  0x6e   :  { %733 = vmatpush1.bf16.msra.mxu1 %v1176_v46  ;;  %699 = vmatprep.subr.bf16.mxu0 %v1186_v49 }
  0x6f   :  { %734 = vmatprep.subr.bf16.mxu1 %v1184_v47 }
  0x71   :  { %700 = vmatpush2.bf16.msra.mxu0 %v1191_v52 }
  0x72   :  { %735 = vmatpush2.bf16.msra.mxu1 %v1182_v50  ;;  %701 = vmatprep.subr.bf16.mxu0 %v1192_v53 }
  0x73   :  { %736 = vmatprep.subr.bf16.mxu1 %v1190_v51  ;;  %v1226_v51 = vld [vmem:[#allocation10 + $0x68] sm:$0xff]  }
  0x75   :  { %702 = vmatpush2.bf16.msra.mxu0 %v1197_v56  ;;  %v1228_v56 = vld [vmem:[#allocation10 + $0x60] sm:$0xff]  }
  0x76   :  { %737 = vmatpush2.bf16.msra.mxu1 %v1188_v54  ;;  %703 = vmatprep.subr.bf16.mxu0 %v1198_v58  ;;  %v1227_v54 = vld [vmem:[#allocation10 + $0x28] sm:$0xff]   ;;  %v1230_v58 = vld [vmem:[#allocation10 + $0x58] sm:$0xff]  }
  0x77   :  { %738 = vmatprep.subr.bf16.mxu1 %v1196_v55 }
  0x79   :  { %704 = vmatpush2.bf16.msra.mxu0 %v1203_v61  ;;  %v1233_v61 = vld [vmem:[#allocation10 + $0x10] sm:$0xff]  }
  0x7a   :  { %739 = vmatpush2.bf16.msra.mxu1 %v1194_v57  ;;  %705 = vmatprep.subr.bf16.mxu0 %v1204_v62  ;;  %v1229_v57 = vld [vmem:[#allocation10 + $0x20] sm:$0xff]   ;;  %v1234_v62 = vld [vmem:[#allocation10 + $0x48] sm:$0xff]  }
  0x7b   :  { %740 = vmatprep.subr.bf16.mxu1 %v1202_v59  ;;  %v1231_v59 = vld [vmem:[#allocation10 + $0x18] sm:$0xff]  }
  0x7d   :  { %706 = vmatpush2.bf16.msra.mxu0 %v1209_v1  ;;  %v1237_v1 = vld [vmem:[#allocation10] sm:$0xff]  }
  0x7e   :  { %741 = vmatpush2.bf16.msra.mxu1 %v1200_v60  ;;  %707 = vmatprep.subr.bf16.mxu0 %v1210_v2  ;;  %v1232_v60 = vld [vmem:[#allocation10 + $0x50] sm:$0xff]  }
  0x7f   :  { %742 = vmatprep.subr.bf16.mxu1 %v1208_v63  ;;  %v1235_v63 = vld [vmem:[#allocation10 + $0x8] sm:$0xff]  }
  0x81   :  { %708 = vmatpush2.bf16.msra.mxu0 %v1215_v5  ;;  %v759_v5 = vld [vmem:[%s1480_s5] sm:$0x3] }
  0x82   :  { %743 = vmatpush2.bf16.msra.mxu1 %v1206_v0  ;;  %1079 = vmatprep.subr.bf16.mxu0 %v1222_v10  ;;  %v1236_v0 = vld [vmem:[#allocation10 + $0x40] sm:$0xff]   ;;  %v768_v12 = vrot.slane %v759_v5, %v1450_v15 }
  0x83   :  { %744 = vmatprep.subr.bf16.mxu1 %v1214_v3 }
  0x86   :  { %745 = vmatpush2.bf16.msra.mxu1 %v1212_v4 }
  0x87   :  { %746 = vmatprep.subr.bf16.mxu1 %v1218_v6 }
  0x8a   :  { %747 = vmatpush2.bf16.msra.mxu1 %v1216_v7  ;;  %v773_v7 = vld [vmem:[%s1481_s6] sm:$0x3] }
  0x8b   :  { %748 = vmatprep.subr.bf16.mxu1 %v1221_v8  ;;  %v764_v8 = vrot.slane %v759_v5, %v1448_v13  ;;  %v778_v11 = vrot.slane %v773_v7, %v1448_v13  ;;  %v1062_v13 = vld [vmem:[%s1483_s8] ss:$0 sm:$0xff] }
  0x8e   :  { %749 = vmatpush2.bf16.msra.mxu1 %v1219_v9 }
 0x109   :  { %v185_v20 = vpop.f32.mrf.mxu1 }
 0x10a   :  { %v255_v21 = vmul.f32 %v238_v17, %v185_v20 }
 0x10b   :  { %v187_v24 = vpop.f32.mrf.mxu1 }
 0x10c   :  { %v281_v25 = vadd.f32 %v264_v18, %v255_v21  ;;  %v256_v26 = vmul.f32 %v242_v19, %v187_v24  ;;  %v782_v18 = vrot.slane %v773_v7, %v1450_v15 }
 0x10d   :  { %v189_v28 = vpop.f32.mrf.mxu1 }
 0x10e   :  { %v282_v30 = vadd.f32 %v268_v23, %v256_v26  ;;  %v285_v31 = vmax.f32 %v281_v25, 0.0 }
 0x10f   :  { %v190_v32 = vpop.f32.mrf.mxu1 }
 0x110   :  { %v286_v35 = vmax.f32 %v282_v30, 0.0  ;;  %v289_v41 = vpack.c.bf16 %v285_v31, %v285_v31 }
 0x111   :  { %v226_v36 = vpop.f32.mrf.mxu1 }
 0x112   :  { %v257_v37 = vmul.f32 %v246_v29, %v226_v36  ;;  %v290_v39 = vpack.c.bf16 %v286_v35, %v286_v35 }
 0x113   :  { %v228_v42 = vpop.f32.mrf.mxu1 }
 0x114   :  { %v283_v44 = vadd.f32 %v272_v33, %v257_v37  ;;  %v258_v45 = vmul.f32 %v250_v34, %v228_v42  ;;  %709 = vmatprep.mubr.bf16.mxu0 %v290_v39 }
 0x115   :  { %v230_v46 = vpop.f32.mrf.mxu1  ;;  %710 = vmatmul.mubr.bf16.vlgmr.msra.gmra.mxu0 %v289_v41 }
 0x116   :  { %v284_v47 = vadd.f32 %v276_v38, %v258_v45  ;;  %1080 = vmatpush3.bf16.msra.mxu0 %v1223_v40  ;;  %v287_v49 = vmax.f32 %v283_v44, 0.0 }
 0x117   :  { %v231_v50 = vpop.f32.mrf.mxu1  ;;  %1081 = vmatprep.subr.bf16.mxu0 %v1224_v43 }
 0x118   :  { %v288_v52 = vmax.f32 %v284_v47, 0.0  ;;  %v291_v55 = vpack.c.bf16 %v287_v49, %v287_v49 }
 0x11a   :  { %v292_v53 = vpack.c.bf16 %v288_v52, %v288_v52  ;;  %1082 = vmatpush3.bf16.msra.mxu0 %v1225_v48 }
 0x11b   :  { %1083 = vmatprep.subr.bf16.mxu0 %v1226_v51 }
 0x11c   :  { %750 = vmatprep.mubr.bf16.mxu1 %v292_v53 }
 0x11d   :  { %751 = vmatmul.mubr.bf16.vlgmr.msra.gmra.mxu1 %v291_v55 }
 0x11e   :  { %1084 = vmatpush3.bf16.msra.mxu0 %v1227_v54 }
 0x11f   :  { %1085 = vmatprep.subr.bf16.mxu0 %v1228_v56 }
 0x122   :  { %1086 = vmatpush3.bf16.msra.mxu0 %v1229_v57 }
 0x123   :  { %1087 = vmatprep.subr.bf16.mxu0 %v1230_v58 }
 0x126   :  { %1088 = vmatpush3.bf16.msra.mxu0 %v1231_v59 }
 0x127   :  { %1089 = vmatprep.subr.bf16.mxu0 %v1232_v60 }
 0x12a   :  { %1090 = vmatpush3.bf16.msra.mxu0 %v1233_v61 }
 0x12b   :  { %1091 = vmatprep.subr.bf16.mxu0 %v1234_v62 }
 0x12e   :  { %1092 = vmatpush3.bf16.msra.mxu0 %v1235_v63 }
 0x12f   :  { %1093 = vmatprep.subr.bf16.mxu0 %v1236_v0 }
 0x132   :  { %1094 = vmatpush3.bf16.msra.mxu0 %v1237_v1 }
 0x1d5   :  { %v711_v2 = vpop.f32.mrf.mxu0 }
 0x1d7   :  { %v713_v3 = vpop.f32.mrf.mxu0 }
 0x1d9   :  { %v715_v4 = vpop.f32.mrf.mxu0 }
 0x1db   :  { %v716_v6 = vpop.f32.mrf.mxu0 }
 0x1dd   :  { %v752_v9 = vpop.f32.mrf.mxu1 }
 0x1de   :  { %v753_v10 = vadd.f32 %v752_v9, %v711_v2 }
 0x1df   :  { %v754_v14 = vpop.f32.mrf.mxu1 }
 0x1e0   :  { %v771_v16 = vmul.f32 %v764_v8, %v753_v10  ;;  %v755_v17 = vadd.f32 %v754_v14, %v713_v3 }
 0x1e1   :  { %v756_v19 = vpop.f32.mrf.mxu1 }
 0x1e2   :  { %v785_v20 = vadd.f32 %v778_v11, %v771_v16  ;;  %v772_v21 = vmul.f32 %v768_v12, %v755_v17 }
 0x1e3   :  { %v757_v22 = vpop.f32.mrf.mxu1 }
 0x1e4   :  { %v786_v23 = vadd.f32 %v782_v18, %v772_v21  ;;  %v787_v24 = vmax.f32 %v785_v20, 0.0 }
 0x1e6   :  { %v788_v25 = vmax.f32 %v786_v23, 0.0  ;;  %v789_v27 = vpack.c.bf16 %v787_v24, %v787_v24 }
 0x1e8   :  { %v790_v26 = vpack.c.bf16 %v788_v25, %v788_v25 }
 0x1ea   :  { %958 = vmatprep.mubr.bf16.mxu0 %v790_v26 }
 0x1eb   :  { %959 = vmatmul.mubr.bf16.vlgmr.msra.gmra.mxu0 %v789_v27 }
 0x2ab   :  { %v1095_v28 = vpop.f32.mrf.mxu0 }
 0x2ad   :  { %v1096_v29 = vpop.f32.mrf.mxu0 }
 0x2ae   :  { %v1097_v30 = vadd.f32 %v1096_v29, %v1095_v28 }
 0x2af   :  { %v1098_v31 = vpop.f32.mrf.mxu0 }
 0x2b0   :  { %v961_v15 = vadd.f32 %v1097_v30, %v1062_v13 }
 0x2b1   :  { %v1099_v32 = vpop.f32.mrf.mxu0 }
 0x2b2   :  { %v966_v33 = vmul.f32 0.5, %v961_v15 }
 0x2b4   :  { %1238 = vtanh.f32 %v966_v33 }
 0x2c1   :  { %v1239_v34 = vpop.eup %1238 }
 0x2c2   :  { %v968_v35 = vadd.f32 1.0, %v1239_v34 }
 0x2c4   :  { %v969_v36 = vmul.f32 0.5, %v968_v35 }
 0x2c6   :  { %970 = vst [vmem:[#allocation11] sm:$0xff] %v969_v36 }
 0x2c7   :  { %1351 = shalt.err (!%p1348_p1)
}
 0x2c8   :  { %980 = dma.vmem_to_hbm [thread:$0]  %s978_s20, 128, %s1484_s9, [#allocation4]  }
 0x2c9   :  { %1366 = dma.done.wait [#allocation4], 128  }
 0x2ca   :  { %1367 = vsyncadd [#allocation4], 4294967168 }
 0x2cb   :  { %984 = vsyncpa [#allocation3], 1 }
 0x2cc   :  { %985 = vsyncpa [#allocation6], 1 }
 0x2cd   :  { %986 = vsyncpa [#allocation9], 1 }
 0x2ce   :  { %987 = vsyncpa [#allocation4], 1 }

</bundles_post_ra>
